<compile_context>
chip_gen: v7x
topology: tpu7x:2x2x1
jax: 0.10.0
libtpu: 0.0.40
codegen_flags: <defaults>
</compile_context>

<pallas_src>
import jax
import jax.numpy as jnp
from jax.experimental import pallas as pl
from jax.experimental.pallas import tpu as pltpu


def policy_net_kernel(x_ref, w1_ref, b1_ref, w2_ref, b2_ref, o_ref):
    # fc1 + ReLU: bf16 operands feed the MXU, accumulate in f32.
    h = jnp.dot(x_ref[...], w1_ref[...], preferred_element_type=jnp.float32)
    h = jnp.maximum(h + b1_ref[...], 0.0)            # bias-add / ReLU in f32 (VPU)
    # fc2: cast activations back to the weight dtype (bf16) for the MXU.
    y = jnp.dot(h.astype(w2_ref.dtype), w2_ref[...],
                preferred_element_type=jnp.float32)
    y = y + b2_ref[...]
    # sigmoid(y) = 1 / (1 + exp(-y)); exp + approx reciprocal run on the EUP slot.
    o_ref[...] = pl.reciprocal(1.0 + jnp.exp(-y), approx=True).astype(o_ref.dtype)


def policy_net(x, w1, b1, w2, b2, *, block_b=1024):
    """Forward pass. x: (B,16); w1: (16,24); b1: (.,24); w2: (24,4); b2: (.,4)."""
    B, in_dim = x.shape
    hid = w1.shape[1]
    out_dim = w2.shape[1]

    # bf16 at the HBM boundary halves the dominant read traffic; accumulation and
    # the epilogue remain f32 inside the kernel. Biases stay f32.
    x_bf = x.astype(jnp.bfloat16)
    w1_bf = w1.astype(jnp.bfloat16)
    w2_bf = w2.astype(jnp.bfloat16)
    b1_2d = jnp.asarray(b1, jnp.float32).reshape(1, hid)
    b2_2d = jnp.asarray(b2, jnp.float32).reshape(1, out_dim)

    # Batch tile: multiple of 8 sublanes, capped at block_b. Pad B so the grid
    # covers it exactly; padded rows produce valid-but-unused values (no OOB).
    tb = min(block_b, max(8, ((B + 7) // 8) * 8))
    padded_b = ((B + tb - 1) // tb) * tb
    if padded_b != B:
        x_bf = jnp.pad(x_bf, ((0, padded_b - B), (0, 0)))

    out = pl.pallas_call(
        policy_net_kernel,
        out_shape=jax.ShapeDtypeStruct((padded_b, out_dim), jnp.float32),
        grid_spec=pltpu.PrefetchScalarGridSpec(
            num_scalar_prefetch=0,
            grid=(padded_b // tb,),
            in_specs=[
                pl.BlockSpec((tb, in_dim), lambda i: (i, 0)),     # x tile (pipelined)
                pl.BlockSpec((in_dim, hid), lambda i: (0, 0)),    # w1: VMEM-resident
                pl.BlockSpec((1, hid), lambda i: (0, 0)),         # b1: VMEM-resident
                pl.BlockSpec((hid, out_dim), lambda i: (0, 0)),   # w2: VMEM-resident
                pl.BlockSpec((1, out_dim), lambda i: (0, 0)),     # b2: VMEM-resident
            ],
            out_specs=pl.BlockSpec((tb, out_dim), lambda i: (i, 0)),
        ),
        compiler_params=pltpu.CompilerParams(
            # Batch iterations are independent: shards across both TCs on v7x,
            # harmless serial loop on v5e/v6e.
            dimension_semantics=("parallel",),
        ),
    )(x_bf, w1_bf, b1_2d, w2_bf, b2_2d)
    return out[:B]


def init_params(key):
    # Deterministic synthetic init mimicking PyTorch Linear (uniform +/- 1/sqrt(fan_in)).
    k1, k2, k3, k4 = jax.random.split(key, 4)
    lim1 = 1.0 / jnp.sqrt(16.0)
    lim2 = 1.0 / jnp.sqrt(24.0)
    w1 = jax.random.uniform(k1, (16, 24), jnp.float32, -lim1, lim1)
    b1 = jax.random.uniform(k2, (1, 24), jnp.float32, -lim1, lim1)
    w2 = jax.random.uniform(k3, (24, 4), jnp.float32, -lim2, lim2)
    b2 = jax.random.uniform(k4, (1, 4), jnp.float32, -lim2, lim2)
    return w1, b1, w2, b2


if __name__ == "__main__":
    key = jax.random.PRNGKey(0)
    kx, kp, kbig = jax.random.split(key, 3)
    w1, b1, w2, b2 = init_params(kp)

    def ref_forward(x):
        # Same semantics as the PyTorch forward (f32 reference).
        return jax.nn.sigmoid(jnp.maximum(x @ w1 + b1, 0.0) @ w2 + b2)

    # Small case (single 8-row tile) — matches the module's typical RL usage.
    x_small = jax.random.normal(kx, (8, 16), jnp.float32)
    out_small = policy_net(x_small, w1, b1, w2, b2)
    jax.block_until_ready(out_small)
    assert out_small.shape == (8, 4)
    assert jnp.allclose(out_small, ref_forward(x_small), atol=2e-2, rtol=2e-2)

    # Larger batch exercises the gridded, pipelined path and the padding path
    # (1000 rows -> two 512-row tiles, last tile partially padded).
    x_big = jax.random.normal(kbig, (1000, 16), jnp.float32)
    out_big = policy_net(x_big, w1, b1, w2, b2, block_b=512)
    jax.block_until_ready(out_big)
    assert out_big.shape == (1000, 4)
    assert jnp.allclose(out_big, ref_forward(x_big), atol=2e-2, rtol=2e-2)

    print("KERNEL_OK")
</pallas_src>

<mosaic_0001>
module attributes {stable_mosaic.version = 11 : i64} {
  func.func @policy_net_kernel(%arg0: i32, %arg1: memref<8x16xbf16, #tpu.memory_space<vmem>>, %arg2: memref<16x24xbf16, #tpu.memory_space<vmem>>, %arg3: memref<1x24xf32, #tpu.memory_space<vmem>>, %arg4: memref<24x4xbf16, #tpu.memory_space<vmem>>, %arg5: memref<1x4xf32, #tpu.memory_space<vmem>>, %arg6: memref<8x4xf32, #tpu.memory_space<vmem>>) attributes {dimension_semantics = [#tpu.dimension_semantics<parallel>], iteration_bounds = array<i64: 1>, scalar_prefetch = 0 : i64, scratch_operands = 0 : i64, tpu.core_type = #tpu.core_type<tc>, window_params = [{transform_indices = @transform_0, window_bounds = array<i64: 8, 16>}, {pipeline_mode = #tpu.pipeline_mode<synchronous>, transform_indices = @transform_1, window_bounds = array<i64: 16, 24>}, {pipeline_mode = #tpu.pipeline_mode<synchronous>, transform_indices = @transform_2, window_bounds = array<i64: 1, 24>}, {pipeline_mode = #tpu.pipeline_mode<synchronous>, transform_indices = @transform_3, window_bounds = array<i64: 24, 4>}, {pipeline_mode = #tpu.pipeline_mode<synchronous>, transform_indices = @transform_4, window_bounds = array<i64: 1, 4>}, {transform_indices = @transform_5, window_bounds = array<i64: 8, 4>}]} {
    %c0 = arith.constant 0 : index
    %c0_0 = arith.constant 0 : index
    %0 = vector.load %arg1[%c0, %c0_0] : memref<8x16xbf16, #tpu.memory_space<vmem>>, vector<8x16xbf16>
    %c0_1 = arith.constant 0 : index
    %c0_2 = arith.constant 0 : index
    %1 = vector.load %arg2[%c0_1, %c0_2] : memref<16x24xbf16, #tpu.memory_space<vmem>>, vector<16x24xbf16>
    %cst = arith.constant dense<0.000000e+00> : vector<8x24xf32>
    %2 = tpu.matmul %0, %1, %cst {dimension_numbers = #tpu.dot_dimension_numbers<[1], [0], [0], [1], [0, 0, 1, 1], [], []>} : vector<8x16xbf16>, vector<16x24xbf16>, vector<8x24xf32> -> vector<8x24xf32>
    %c0_3 = arith.constant 0 : index
    %c0_4 = arith.constant 0 : index
    %3 = vector.load %arg3[%c0_3, %c0_4] : memref<1x24xf32, #tpu.memory_space<vmem>>, vector<1x24xf32>
    %4 = vector.broadcast %3 : vector<1x24xf32> to vector<8x24xf32>
    %5 = arith.addf %2, %4 : vector<8x24xf32>
    %cst_5 = arith.constant 0.000000e+00 : f32
    %6 = vector.broadcast %cst_5 : f32 to vector<8x24xf32>
    %7 = arith.maximumf %5, %6 : vector<8x24xf32>
    %8 = arith.truncf %7 : vector<8x24xf32> to vector<8x24xbf16>
    %c0_6 = arith.constant 0 : index
    %c0_7 = arith.constant 0 : index
    %9 = vector.load %arg4[%c0_6, %c0_7] : memref<24x4xbf16, #tpu.memory_space<vmem>>, vector<24x4xbf16>
    %cst_8 = arith.constant dense<0.000000e+00> : vector<8x4xf32>
    %10 = tpu.matmul %8, %9, %cst_8 {dimension_numbers = #tpu.dot_dimension_numbers<[1], [0], [0], [1], [0, 0, 1, 1], [], []>} : vector<8x24xbf16>, vector<24x4xbf16>, vector<8x4xf32> -> vector<8x4xf32>
    %c0_9 = arith.constant 0 : index
    %c0_10 = arith.constant 0 : index
    %11 = vector.load %arg5[%c0_9, %c0_10] : memref<1x4xf32, #tpu.memory_space<vmem>>, vector<1x4xf32>
    %12 = vector.broadcast %11 : vector<1x4xf32> to vector<8x4xf32>
    %13 = arith.addf %10, %12 : vector<8x4xf32>
    %cst_11 = arith.constant 0.000000e+00 : f32
    %14 = vector.broadcast %cst_11 : f32 to vector<8x4xf32>
    %15 = arith.subf %14, %13 : vector<8x4xf32>
    %16 = math.exp %15 : vector<8x4xf32>
    %cst_12 = arith.constant 1.000000e+00 : f32
    %17 = vector.broadcast %cst_12 : f32 to vector<8x4xf32>
    %18 = arith.addf %17, %16 : vector<8x4xf32>
    %19 = tpu.reciprocal %18 {approx = true} : vector<8x4xf32> -> vector<8x4xf32>
    %c0_13 = arith.constant 0 : index
    %c0_14 = arith.constant 0 : index
    %20 = vector.load %arg6[%c0_13, %c0_14] : memref<8x4xf32, #tpu.memory_space<vmem>>, vector<8x4xf32>
    tpu.vector_store %arg6[%c0_13, %c0_14], %19 {strides = array<i32>} : memref<8x4xf32, #tpu.memory_space<vmem>>, vector<8x4xf32>,
    return
  }
  func.func @transform_0(%arg0: i32) -> (i32, i32) {
    %c0_i32 = arith.constant 0 : i32
    %c0_i32_0 = arith.constant 0 : i32
    return %arg0, %c0_i32 : i32, i32
  }
  func.func @transform_1(%arg0: i32) -> (i32, i32) {
    %c0_i32 = arith.constant 0 : i32
    %c0_i32_0 = arith.constant 0 : i32
    %c0_i32_1 = arith.constant 0 : i32
    return %c0_i32, %c0_i32_0 : i32, i32
  }
  func.func @transform_2(%arg0: i32) -> (i32, i32) {
    %c0_i32 = arith.constant 0 : i32
    %c0_i32_0 = arith.constant 0 : i32
    %c0_i32_1 = arith.constant 0 : i32
    return %c0_i32, %c0_i32_0 : i32, i32
  }
  func.func @transform_3(%arg0: i32) -> (i32, i32) {
    %c0_i32 = arith.constant 0 : i32
    %c0_i32_0 = arith.constant 0 : i32
    %c0_i32_1 = arith.constant 0 : i32
    return %c0_i32, %c0_i32_0 : i32, i32
  }
  func.func @transform_4(%arg0: i32) -> (i32, i32) {
    %c0_i32 = arith.constant 0 : i32
    %c0_i32_0 = arith.constant 0 : i32
    %c0_i32_1 = arith.constant 0 : i32
    return %c0_i32, %c0_i32_0 : i32, i32
  }
  func.func @transform_5(%arg0: i32) -> (i32, i32) {
    %c0_i32 = arith.constant 0 : i32
    %c0_i32_0 = arith.constant 0 : i32
    return %arg0, %c0_i32 : i32, i32
  }
}

</mosaic_0001>

<bundles_post_ra>
// kernel: tpu_custom_call.1
= control target key start
LH: loop header
LB: loop body
LE: loop exit
PB: predicated region body
PF: predicated region fallthrough
CT: control target
= control target key end

     0   :  { %v196_v0 = vmov 0.0   ;;  %vm197_vm0 = vmmov 0   ;;  %vm37_vm1 = vcmask 130048   ;;  %vm106_vm2 = vcmask 1043456   ;;  %s249_s1 = inlined_call_operand.vmem [shape: bf16[16,24], index: 1, kind: input, shape index: {}]   ;;  %s250_s0 = inlined_call_operand.vmem [shape: bf16[8,16], index: 0, kind: input, shape index: {}]   ;;  %s251_s3 = inlined_call_operand.vmem [shape: bf16[24,4], index: 3, kind: input, shape index: {}]   ;;  %s252_s2 = inlined_call_operand.vmem [shape: f32[1,24], index: 2, kind: input, shape index: {}]   ;;  %s253_s4 = inlined_call_operand.vmem [shape: f32[1,4], index: 4, kind: input, shape index: {}]   ;;  %s254_s5 = inlined_call_operand.vmem [shape: f32[8,4], index: 5, kind: output, shape index: {}]  }
   0x1   :  { %173 = vmatprep.subr.bf16.mxu0 %v196_v0  ;;  %v189_v1 = vld [vmem:[%s249_s1] sm:$0xff]   ;;  %175 = vmatprep.mubr.msk.bf16.mxu0 %vm197_vm0, %v196_v0  ;;  %v191_v4 = vld [vmem:[%s251_s3 + $0x8] ss:$0 sps:$4 sm:$0xff]   ;;  %vm102_vm3 = vcmask 195584   ;;  %vm155_vm4 = vcmask 31744  }
   0x2   :  { %179 = vmatprep.subr.bf16.mxu1 %v196_v0  ;;  %183 = vmatprep.mubr.msk.bf16.mxu1 %vm197_vm0, %v196_v0  ;;  %v21_v2 = vld [vmem:[%s250_s0] sm:$0xf]  ;;  %v108_v5 = vsel %vm106_vm2, %v191_v4, 0 }
   0x3   :  { %174 = vmatpush3.bf16.msra.mxu0 %v189_v1  ;;  %v190_v3 = vld [vmem:[%s251_s3] sm:$0xff]  }
   0x4   :  { %180 = vmatpush3.bf16.msra.mxu1 %v190_v3  ;;  %v161_v6 = vld [vmem:[%s252_s2] ss:$0 sm:$0xff] }
   0x5   :  { %181 = vmatprep.subr.bf16.mxu1 %v196_v0  ;;  %v164_v14 = vld [vmem:[%s253_s4] ss:$0 sm:$0xff] }
   0x6   :  { %176 = vmatmul.mubr.msk.bf16.vlgmr.msra.gmra.mrb[0].mxu0 %vm37_vm1, %v21_v2 }
   0x8   :  { %182 = vmatpush3.bf16.msra.mxu1 %v108_v5 }
  0xd9   :  { %v75_v7 = vpop.f32.mrb[0].mxu0 }
  0xda   :  { %v76_v8 = vadd.f32 %v161_v6, %v75_v7  ;;  %v177_v9 = vpop.f32.mrb[1].mxu0 }
  0xdb   :  { %v78_v10 = vpop.f32.mrb[2].mxu0 }
  0xdc   :  { %v81_v11 = vmax.f32 %v76_v8, 0.0  ;;  %v178_v12 = vpop.f32.mrb[3].mxu0 }
  0xde   :  { %v82_v13 = vpack.c.bf16 %v81_v11, %v81_v11 }
  0xe0   :  { %184 = vmatmul.mubr.msk.bf16.vlgmr.msra.gmra.mrb[0].mxu1 %vm102_vm3, %v82_v13 }
 0x1b3   :  { %v144_v15 = vpop.f32.mrb[0].mxu1 }
 0x1b4   :  { %v145_v16 = vadd.f32 %v164_v14, %v144_v15  ;;  %v185_v17 = vpop.f32.mrb[1].mxu1 }
 0x1b5   :  { %v147_v18 = vpop.f32.mrb[2].mxu1 }
 0x1b6   :  { %v150_v19 = vsub.f32 0.0, %v145_v16  ;;  %v186_v20 = vpop.f32.mrb[3].mxu1 }
 0x1b8   :  { %v151_v21 = vmul.f32 1.442695, %v150_v19 }
 0x1ba   :  { %192 = vpow2.f32 %v151_v21 }
 0x1c4   :  { %v193_v22 = vpop.eup %192 }
 0x1c5   :  { %v153_v23 = vadd.f32 1.0, %v193_v22 }
 0x1c7   :  { %194 = vrcp.f32 %v153_v23 }
 0x1d1   :  { %v195_v24 = vpop.eup %194 }
 0x1d2   :  { %156 = vst.msk [vmem:[%s254_s5] sm:$0xff] %vm155_vm4, %v195_v24 }

</bundles_post_ra>
